<compile_context>
chip_gen: v7x
topology: tpu7x:2x2x1
jax: 0.10.0
libtpu: 0.0.40
codegen_flags: <defaults>
</compile_context>

<pallas_src>
import math
from functools import partial

import jax
import jax.numpy as jnp
from jax.experimental import pallas as pl
from jax.experimental.pallas import tpu as pltpu


# --------------------------------------------------------------------------- #
# Kernel
# --------------------------------------------------------------------------- #
def _copy_kernel(x_ref, o_ref):
    # Identity copy — the only data movement a reshape can require.
    o_ref[...] = x_ref[...]


_LANE_CHOICES = (1024, 512, 256, 128)
_TARGET_TILE_ELEMS = 512 * 1024  # ~2 MiB of f32 per tile buffer (safe on v5e/v6e/v7x)


def _choose_flat_shape(shape):
    """Pick a lane-dense 2-D view (rows, lanes) with lanes a multiple of 128."""
    n = int(math.prod(shape)) if len(shape) else 1
    for lanes in _LANE_CHOICES:
        if n >= lanes and n % lanes == 0:
            return (n // lanes, lanes)
    # Fallback for element counts not divisible by 128: keep the natural
    # (rows, last_dim) view; the block stays full-extent in the lane dim.
    if len(shape) >= 2:
        return (int(math.prod(shape[:-1])), int(shape[-1]))
    return (1, max(n, 1))


def _pallas_identity_copy(flat):
    """Tiled, lane-dense, pipelined identity copy of a 2-D array through VMEM."""
    rows, lanes = flat.shape

    # Row-tile sizing: ~2 MiB per tile, multiple of 8 sublanes (or full extent).
    max_tile_rows = max(8, (_TARGET_TILE_ELEMS // max(lanes, 1)) // 8 * 8)
    if rows <= max_tile_rows:
        tile_r = rows                      # full extent -> always a legal block
    else:
        tile_r = max_tile_rows             # multiple of 8; partial last block is masked

    grid = (pl.cdiv(rows, tile_r),)

    return pl.pallas_call(
        _copy_kernel,
        out_shape=jax.ShapeDtypeStruct(flat.shape, flat.dtype),
        grid=grid,
        in_specs=[pl.BlockSpec((tile_r, lanes), lambda i: (i, 0))],
        out_specs=pl.BlockSpec((tile_r, lanes), lambda i: (i, 0)),
        input_output_aliases={0: 0},       # no extra HBM buffer for the output
        compiler_params=pltpu.CompilerParams(
            dimension_semantics=("parallel",)),  # shard the copy across v7x's 2 TCs
    )(flat)


# --------------------------------------------------------------------------- #
# Module wrapper
# --------------------------------------------------------------------------- #
@partial(jax.jit, static_argnames=("target_shape",))
def _reshape_impl(x, target_shape):
    flat = x.reshape(_choose_flat_shape(x.shape))   # metadata only
    out_flat = _pallas_identity_copy(flat)          # pipelined identity copy
    return out_flat.reshape(target_shape)           # metadata only


def _resolve_shape(shape, total):
    """Resolve a single -1 entry (torch .view semantics)."""
    shape = [int(d) for d in shape]
    if -1 in shape:
        idx = shape.index(-1)
        known = 1
        for j, d in enumerate(shape):
            if j != idx:
                known *= d
        shape[idx] = total // known
    return tuple(shape)


def reshape(x, new_shape):
    """Pallas-backed equivalent of Reshape(new_shape).forward(x)."""
    if isinstance(x, dict):
        out = x.pop('out')
        x.update({'out': reshape(out, new_shape)})
        return x

    bs = x.shape[0]
    target = _resolve_shape((bs,) + tuple(new_shape), int(x.size))
    return _reshape_impl(x, target)


# --------------------------------------------------------------------------- #
# Self-test
# --------------------------------------------------------------------------- #
if __name__ == "__main__":
    key = jax.random.PRNGKey(0)
    # Small NCHW-like tensor: batch=2, channels=4, spatial=16x16.
    x = jax.random.normal(key, (2, 4, 16, 16), dtype=jnp.float32)

    new_shape = (16, 8, 8)  # the module's __init__ argument (deterministic choice)
    y = reshape(x, new_shape)
    y = jax.block_until_ready(y)

    ref = jnp.reshape(x, (2, 16, 8, 8))
    assert y.shape == (2, 16, 8, 8), y.shape
    assert y.dtype == x.dtype
    assert bool(jnp.array_equal(y, ref))

    # -1 inference path (torch .view semantics).
    y2 = jax.block_until_ready(reshape(x, (4, -1)))
    assert y2.shape == (2, 4, 256), y2.shape
    assert bool(jnp.array_equal(y2, jnp.reshape(x, (2, 4, 256))))

    # Dict code path of the module.
    d_in = {"out": x, "other": jnp.ones((3,), jnp.float32)}
    d_out = reshape(d_in, new_shape)
    assert d_out["out"].shape == (2, 16, 8, 8)
    assert bool(jnp.array_equal(d_out["out"], ref))
    assert "other" in d_out

    print("KERNEL_OK")
</pallas_src>

<mosaic_0001>
module attributes {stable_mosaic.version = 11 : i64} {
  func.func @_copy_kernel(%arg0: i32, %arg1: memref<2x1024xf32, #tpu.memory_space<vmem>>, %arg2: memref<2x1024xf32, #tpu.memory_space<vmem>>) attributes {dimension_semantics = [#tpu.dimension_semantics<parallel>], iteration_bounds = array<i64: 1>, scalar_prefetch = 0 : i64, scratch_operands = 0 : i64, tpu.core_type = #tpu.core_type<tc>, window_params = [{transform_indices = @transform_0, window_bounds = array<i64: 2, 1024>}, {transform_indices = @transform_1, window_bounds = array<i64: 2, 1024>}]} {
    %c0 = arith.constant 0 : index
    %c0_0 = arith.constant 0 : index
    %0 = vector.load %arg1[%c0, %c0_0] : memref<2x1024xf32, #tpu.memory_space<vmem>>, vector<2x1024xf32>
    %c0_1 = arith.constant 0 : index
    %c0_2 = arith.constant 0 : index
    %1 = vector.load %arg2[%c0_1, %c0_2] : memref<2x1024xf32, #tpu.memory_space<vmem>>, vector<2x1024xf32>
    tpu.vector_store %arg2[%c0_1, %c0_2], %0 {strides = array<i32>} : memref<2x1024xf32, #tpu.memory_space<vmem>>, vector<2x1024xf32>,
    return
  }
  func.func @transform_0(%arg0: i32) -> (i32, i32) {
    %c0_i32 = arith.constant 0 : i32
    %c0_i32_0 = arith.constant 0 : i32
    return %arg0, %c0_i32 : i32, i32
  }
  func.func @transform_1(%arg0: i32) -> (i32, i32) {
    %c0_i32 = arith.constant 0 : i32
    %c0_i32_0 = arith.constant 0 : i32
    return %arg0, %c0_i32 : i32, i32
  }
}

</mosaic_0001>

<bundles_post_ra>
// kernel: _reshape_impl.1
= control target key start
LH: loop header
LB: loop body
LE: loop exit
PB: predicated region body
PF: predicated region fallthrough
CT: control target
= control target key end

     0   :  { %s38_s0 = inlined_call_operand.vmem [shape: f32[2,1024], index: 0, kind: input, shape index: {}, may-alias: {0,1}]   ;;  %s39_s1 = inlined_call_operand.vmem [shape: f32[2,1024], index: 1, kind: output, shape index: {}, may-alias: {0,1}]  }
   0x1   :  { %v8_v0 = vld [vmem:[%s38_s0] sm:$0xff]  ;;  %v9_v1 = vld [vmem:[%s38_s0 + $0x8] sm:$0xff] }
   0x2   :  { %10 = vst [vmem:[%s39_s1] sm:$0xff] %v8_v0  ;;  %11 = vst [vmem:[%s39_s1 + $0x8] sm:$0xff] %v9_v1 }

</bundles_post_ra>
